<compile_context>
chip_gen: v7x
topology: tpu7x:2x2x1
jax: 0.10.0
libtpu: 0.0.40
codegen_flags: <defaults>
</compile_context>

<pallas_src>
import math
import jax
import jax.numpy as jnp
from jax.experimental import pallas as pl
from jax.experimental.pallas import tpu as pltpu

LN_EPS = 1e-5
_MISH_CLAMP = 20.0  # tanh(softplus(x)) == 1.0 in f32 well before x = 20


def linear_module_kernel(x_ref, w_ref, b_ref, gamma_ref, beta_ref, o_ref):
    x = x_ref[...]                                     # [TB, Fin], input dtype
    w = w_ref[...]                                     # [Fin, Fout], input dtype

    # --- Linear: MXU matmul in the operand dtype, f32 accumulator ---
    y = jnp.dot(x, w, preferred_element_type=jnp.float32)       # [TB, Fout] f32
    y = y + b_ref[...].astype(jnp.float32)

    # --- LayerNorm over out_features: single fused pass (E[y], E[y^2]) ---
    inv_f = jnp.float32(1.0 / y.shape[-1])
    mean = jnp.sum(y, axis=-1, keepdims=True) * inv_f
    msq = jnp.sum(y * y, axis=-1, keepdims=True) * inv_f
    var = jnp.maximum(msq - mean * mean, 0.0)
    yn = (y - mean) * jax.lax.rsqrt(var + LN_EPS)
    yn = yn * gamma_ref[...].astype(jnp.float32) + beta_ref[...].astype(jnp.float32)

    # --- Mish: yn * tanh(softplus(yn)) via a single exp:
    #       e = exp(yn);  t = e*(e+2) / (e*(e+2) + 2)  ==  tanh(log1p(e))
    #     Clamp avoids inf/inf for large yn (t -> 1 there anyway).
    #     (pl.reciprocal(..., approx=True) could replace the divide if ~1e-3
    #      relative error is acceptable.)
    yc = jnp.minimum(yn, _MISH_CLAMP)
    e = jnp.exp(yc)
    n = e * (e + 2.0)
    t = n / (n + 2.0)
    act = yn * t

    # --- Residual add in the input dtype (in_features == out_features) ---
    o_ref[...] = (x + act.astype(x.dtype)).astype(o_ref.dtype)


def linear_module_forward(x, w, b, gamma, beta, *, block_b=256,
                          vmem_limit_bytes=None):
    """x: [B, F_in], w: [F_in, F_out] (transposed vs torch), b/gamma/beta: [F_out]."""
    B, Fin = x.shape
    Fin_w, Fout = w.shape
    assert Fin_w == Fin
    assert Fin == Fout, "residual path requires in_features == out_features"

    # Batch tile: multiple of 8 (sublane granularity), capped by B / block_b.
    tb = max(8, ((min(block_b, B) + 7) // 8) * 8)
    n_blocks = pl.cdiv(B, tb)
    B_pad = n_blocks * tb
    x_in = jnp.pad(x, ((0, B_pad - B), (0, 0))) if B_pad != B else x

    b2 = b.reshape(1, Fout)
    g2 = gamma.reshape(1, Fout)
    be2 = beta.reshape(1, Fout)

    # Explicit VMEM budget: resident weight + small vectors + double-buffered
    # x/out tiles + f32 intermediates, with headroom. Capped at 64 MiB (v7x).
    need = (
        2 * Fin * Fout * w.dtype.itemsize          # weight (buffered)
        + 2 * 3 * Fout * 4                         # bias / gamma / beta
        + 2 * tb * Fin * x.dtype.itemsize          # double-buffered x tiles
        + 2 * tb * Fout * x.dtype.itemsize         # double-buffered out tiles
        + 4 * tb * Fout * 4                        # f32 intermediates headroom
    )
    if vmem_limit_bytes is None:
        vmem_limit_bytes = min(int(need * 1.5) + (4 << 20), 64 << 20)

    out = pl.pallas_call(
        linear_module_kernel,
        out_shape=jax.ShapeDtypeStruct((B_pad, Fout), x.dtype),
        grid=(n_blocks,),
        in_specs=[
            pl.BlockSpec((tb, Fin), lambda i: (i, 0)),       # x tile (pipelined)
            pl.BlockSpec((Fin, Fout), lambda i: (0, 0)),     # weight (resident)
            pl.BlockSpec((1, Fout), lambda i: (0, 0)),       # bias
            pl.BlockSpec((1, Fout), lambda i: (0, 0)),       # gamma
            pl.BlockSpec((1, Fout), lambda i: (0, 0)),       # beta
        ],
        out_specs=pl.BlockSpec((tb, Fout), lambda i: (i, 0)),
        compiler_params=pltpu.CompilerParams(
            dimension_semantics=("parallel",),
            vmem_limit_bytes=vmem_limit_bytes,
        ),
    )(x_in, w, b2, g2, be2)

    return out[:B] if B_pad != B else out


def reference_forward(x, w, b, gamma, beta):
    y = x @ w + b
    mean = jnp.mean(y, axis=-1, keepdims=True)
    var = jnp.mean((y - mean) ** 2, axis=-1, keepdims=True)
    yn = (y - mean) / jnp.sqrt(var + LN_EPS) * gamma + beta
    act = yn * jnp.tanh(jax.nn.softplus(yn))
    return x + act


if __name__ == "__main__":
    # in_features == out_features so use_residual applies; F = 128 keeps the
    # output lane-dense; block_b=32 exercises multi-tile pipelining (grid=(2,)).
    B, F = 64, 128

    key = jax.random.PRNGKey(0)
    kx, kw, kb = jax.random.split(key, 3)

    x = jax.random.normal(kx, (B, F), dtype=jnp.float32)

    # Deterministic param init mimicking torch.nn.Linear defaults:
    # U(-1/sqrt(in_features), 1/sqrt(in_features)); stored transposed [F_in, F_out].
    bound = 1.0 / math.sqrt(F)
    w = jax.random.uniform(kw, (F, F), minval=-bound, maxval=bound, dtype=jnp.float32)
    b = jax.random.uniform(kb, (F,), minval=-bound, maxval=bound, dtype=jnp.float32)
    # LayerNorm default init
    gamma = jnp.ones((F,), dtype=jnp.float32)
    beta = jnp.zeros((F,), dtype=jnp.float32)

    out = linear_module_forward(x, w, b, gamma, beta, block_b=32)
    out = jax.block_until_ready(out)

    ref = reference_forward(x, w, b, gamma, beta)
    assert out.shape == (B, F)
    assert jnp.allclose(out, ref, atol=1e-4, rtol=1e-4), "mismatch vs reference"

    print("KERNEL_OK")
</pallas_src>

<mosaic_0001>
module attributes {stable_mosaic.version = 11 : i64} {
  func.func @linear_module_kernel(%arg0: i32, %arg1: memref<32x128xf32, #tpu.memory_space<vmem>>, %arg2: memref<128x128xf32, #tpu.memory_space<vmem>>, %arg3: memref<1x128xf32, #tpu.memory_space<vmem>>, %arg4: memref<1x128xf32, #tpu.memory_space<vmem>>, %arg5: memref<1x128xf32, #tpu.memory_space<vmem>>, %arg6: memref<32x128xf32, #tpu.memory_space<vmem>>) attributes {dimension_semantics = [#tpu.dimension_semantics<parallel>], iteration_bounds = array<i64: 2>, scalar_prefetch = 0 : i64, scratch_operands = 0 : i64, tpu.core_type = #tpu.core_type<tc>, window_params = [{transform_indices = @transform_0, window_bounds = array<i64: 32, 128>}, {pipeline_mode = #tpu.pipeline_mode<synchronous>, transform_indices = @transform_1, window_bounds = array<i64: 128, 128>}, {pipeline_mode = #tpu.pipeline_mode<synchronous>, transform_indices = @transform_2, window_bounds = array<i64: 1, 128>}, {pipeline_mode = #tpu.pipeline_mode<synchronous>, transform_indices = @transform_3, window_bounds = array<i64: 1, 128>}, {pipeline_mode = #tpu.pipeline_mode<synchronous>, transform_indices = @transform_4, window_bounds = array<i64: 1, 128>}, {transform_indices = @transform_5, window_bounds = array<i64: 32, 128>}]} {
    %c0 = arith.constant 0 : index
    %c0_0 = arith.constant 0 : index
    %0 = vector.load %arg1[%c0, %c0_0] : memref<32x128xf32, #tpu.memory_space<vmem>>, vector<32x128xf32>
    %c0_1 = arith.constant 0 : index
    %c0_2 = arith.constant 0 : index
    %1 = vector.load %arg2[%c0_1, %c0_2] : memref<128x128xf32, #tpu.memory_space<vmem>>, vector<128x128xf32>
    %cst = arith.constant dense<0.000000e+00> : vector<32x128xf32>
    %2 = tpu.matmul %0, %1, %cst {dimension_numbers = #tpu.dot_dimension_numbers<[1], [0], [0], [1], [0, 0, 1, 1], [], []>} : vector<32x128xf32>, vector<128x128xf32>, vector<32x128xf32> -> vector<32x128xf32>
    %c0_3 = arith.constant 0 : index
    %c0_4 = arith.constant 0 : index
    %3 = vector.load %arg3[%c0_3, %c0_4] : memref<1x128xf32, #tpu.memory_space<vmem>>, vector<1x128xf32>
    %4 = vector.broadcast %3 : vector<1x128xf32> to vector<32x128xf32>
    %5 = arith.addf %2, %4 : vector<32x128xf32>
    %cst_5 = arith.constant dense<0.000000e+00> : vector<32xf32>
    %6 = vector.multi_reduction <add>, %5, %cst_5 [1] : vector<32x128xf32> to vector<32xf32>
    %7 = vector.shape_cast %6 : vector<32xf32> to vector<32x1xf32>
    %cst_6 = arith.constant 7.812500e-03 : f32
    %8 = vector.broadcast %cst_6 : f32 to vector<32x1xf32>
    %9 = arith.mulf %7, %8 : vector<32x1xf32>
    %10 = arith.mulf %5, %5 : vector<32x128xf32>
    %cst_7 = arith.constant dense<0.000000e+00> : vector<32xf32>
    %11 = vector.multi_reduction <add>, %10, %cst_7 [1] : vector<32x128xf32> to vector<32xf32>
    %12 = vector.shape_cast %11 : vector<32xf32> to vector<32x1xf32>
    %cst_8 = arith.constant 7.812500e-03 : f32
    %13 = vector.broadcast %cst_8 : f32 to vector<32x1xf32>
    %14 = arith.mulf %12, %13 : vector<32x1xf32>
    %15 = arith.mulf %9, %9 : vector<32x1xf32>
    %16 = arith.subf %14, %15 : vector<32x1xf32>
    %cst_9 = arith.constant 0.000000e+00 : f32
    %17 = vector.broadcast %cst_9 : f32 to vector<32x1xf32>
    %18 = arith.maximumf %16, %17 : vector<32x1xf32>
    %19 = vector.broadcast %9 : vector<32x1xf32> to vector<32x128xf32>
    %20 = arith.subf %5, %19 : vector<32x128xf32>
    %cst_10 = arith.constant 9.99999974E-6 : f32
    %21 = vector.broadcast %cst_10 : f32 to vector<32x1xf32>
    %22 = arith.addf %18, %21 : vector<32x1xf32>
    %23 = math.rsqrt %22 : vector<32x1xf32>
    %24 = vector.broadcast %23 : vector<32x1xf32> to vector<32x128xf32>
    %25 = arith.mulf %20, %24 : vector<32x128xf32>
    %c0_11 = arith.constant 0 : index
    %c0_12 = arith.constant 0 : index
    %26 = vector.load %arg4[%c0_11, %c0_12] : memref<1x128xf32, #tpu.memory_space<vmem>>, vector<1x128xf32>
    %27 = vector.broadcast %26 : vector<1x128xf32> to vector<32x128xf32>
    %28 = arith.mulf %25, %27 : vector<32x128xf32>
    %c0_13 = arith.constant 0 : index
    %c0_14 = arith.constant 0 : index
    %29 = vector.load %arg5[%c0_13, %c0_14] : memref<1x128xf32, #tpu.memory_space<vmem>>, vector<1x128xf32>
    %30 = vector.broadcast %29 : vector<1x128xf32> to vector<32x128xf32>
    %31 = arith.addf %28, %30 : vector<32x128xf32>
    %cst_15 = arith.constant 2.000000e+01 : f32
    %32 = vector.broadcast %cst_15 : f32 to vector<32x128xf32>
    %33 = arith.minimumf %31, %32 : vector<32x128xf32>
    %34 = math.exp %33 : vector<32x128xf32>
    %cst_16 = arith.constant 2.000000e+00 : f32
    %35 = vector.broadcast %cst_16 : f32 to vector<32x128xf32>
    %36 = arith.addf %34, %35 : vector<32x128xf32>
    %37 = arith.mulf %34, %36 : vector<32x128xf32>
    %cst_17 = arith.constant 2.000000e+00 : f32
    %38 = vector.broadcast %cst_17 : f32 to vector<32x128xf32>
    %39 = arith.addf %37, %38 : vector<32x128xf32>
    %40 = arith.divf %37, %39 : vector<32x128xf32>
    %41 = arith.mulf %31, %40 : vector<32x128xf32>
    %42 = arith.addf %0, %41 : vector<32x128xf32>
    %c0_18 = arith.constant 0 : index
    %c0_19 = arith.constant 0 : index
    %43 = vector.load %arg6[%c0_18, %c0_19] : memref<32x128xf32, #tpu.memory_space<vmem>>, vector<32x128xf32>
    tpu.vector_store %arg6[%c0_18, %c0_19], %42 {strides = array<i32>} : memref<32x128xf32, #tpu.memory_space<vmem>>, vector<32x128xf32>,
    return
  }
  func.func @transform_0(%arg0: i32) -> (i32, i32) {
    %c0_i32 = arith.constant 0 : i32
    %c0_i32_0 = arith.constant 0 : i32
    return %arg0, %c0_i32 : i32, i32
  }
  func.func @transform_1(%arg0: i32) -> (i32, i32) {
    %c0_i32 = arith.constant 0 : i32
    %c0_i32_0 = arith.constant 0 : i32
    %c0_i32_1 = arith.constant 0 : i32
    return %c0_i32, %c0_i32_0 : i32, i32
  }
  func.func @transform_2(%arg0: i32) -> (i32, i32) {
    %c0_i32 = arith.constant 0 : i32
    %c0_i32_0 = arith.constant 0 : i32
    %c0_i32_1 = arith.constant 0 : i32
    return %c0_i32, %c0_i32_0 : i32, i32
  }
  func.func @transform_3(%arg0: i32) -> (i32, i32) {
    %c0_i32 = arith.constant 0 : i32
    %c0_i32_0 = arith.constant 0 : i32
    %c0_i32_1 = arith.constant 0 : i32
    return %c0_i32, %c0_i32_0 : i32, i32
  }
  func.func @transform_4(%arg0: i32) -> (i32, i32) {
    %c0_i32 = arith.constant 0 : i32
    %c0_i32_0 = arith.constant 0 : i32
    %c0_i32_1 = arith.constant 0 : i32
    return %c0_i32, %c0_i32_0 : i32, i32
  }
  func.func @transform_5(%arg0: i32) -> (i32, i32) {
    %c0_i32 = arith.constant 0 : i32
    %c0_i32_0 = arith.constant 0 : i32
    return %arg0, %c0_i32 : i32, i32
  }
}

</mosaic_0001>

<bundles_post_ra>
// kernel: tpu_custom_call.1
= control target key start
LH: loop header
LB: loop body
LE: loop exit
PB: predicated region body
PF: predicated region fallthrough
CT: control target
= control target key end

     0   :  { %10 = vsyncpa [#allocation3], 0  ;;  %s1224_s0 = inlined_call_operand.hbm [shape: f32[64,128], index: 0, kind: input, shape index: {}]   ;;  %s1225_s1 = inlined_call_operand.hbm [shape: f32[128,128], index: 1, kind: input, shape index: {}]   ;;  %s1226_s2 = inlined_call_operand.vmem [shape: f32[1,128], index: 2, kind: input, shape index: {}]   ;;  %s1227_s3 = inlined_call_operand.vmem [shape: f32[1,128], index: 3, kind: input, shape index: {}]   ;;  %s1228_s4 = inlined_call_operand.vmem [shape: f32[1,128], index: 4, kind: input, shape index: {}]   ;;  %s1229_s5 = inlined_call_operand.hbm [shape: f32[64,128], index: 5, kind: output, shape index: {}]  }
   0x1   :  { %12 = vsyncpa [#allocation3 + $0x1], 0 }
   0x2   :  { %13 = vsyncpa [#allocation6], 0 }
   0x3   :  { %14 = vsyncpa [#allocation4], 0 }
   0x4   :  { %16 = vsyncpa [#allocation4 + $0x1], 0  ;;  %s970_s18 = smov 0   ;;  %s972_s19 = smov 0  }
   0x5   :  { %s974_s20 = smov 0   ;;  %s976_s21 = smov 0  }
   0x6 LB: > { %s991_s22 = sadd.s32 4294967295, %s931_s21   ;;  %s591_s23 = sadd.s32 4294967294, %s931_s21   ;;  %s931_s21 = sphi %s976_s21, %s1249_s21   ;;  %s927_s20 = sphi %s974_s20, %s1248_s20   ;;  %s923_s19 = sphi %s972_s19, %s1247_s19   ;;  %s919_s18 = sphi %s970_s18, %s1246_s18  }
   0x7   : > { %p42_p0 = scmp.ne.s32.totalorder %s923_s19, %s919_s18  ;;  %p1230_p1 = scmp.eq.s32.totalorder %s991_s22, 0 }
   0x8   : > { %p156_p3 = scmp.eq.s32.totalorder %s591_s23, 1  ;;  %p592_p5 = scmp.ge.s32.totalorder %s931_s21, 1 }
   0x9   : > { %p1000_p4 = por %p1230_p1, %p42_p0  ;;  %p163_p7 = scmp.lt.s32.totalorder %s931_s21, 3 }
   0xa   : > { %p1005_p6 = por %p156_p3, %p42_p0  ;;  %s933_s27 = smov [#allocation5]  }
   0xb   : > { %s1233_s24 = scalar_select %p1000_p4, 1, 0 }
   0xc   : > { %s1234_s25 = scalar_select %p1005_p6, 1, 0 }
   0xd   : > { %p1010_p8 = pnand %p592_p5, %p163_p7  ;;  %s175_s28 = sshll.u32 %s933_s27, 4  ;;  %s1014_s28 = int_to_ptr.vmem [resolvable:$true] %s175_s28 }
   0xe   : > { %s1026_s30 = sadd.s32 1, %s931_s21   ;;  %s29_s6 = sadd.s32 1, %s927_s20 }
   0xf   : > { %s1235_s26 = scalar_select %p1010_p8, 1, 0 }
  0x10   : > { %p726_p9 = pneg %p1010_p8  ;;  %s26_s7 = ssub.s32 %s931_s21, %s1026_s30 }
  0x11   : > { %s803_s10 = scalar_lea.hbm %s1225_s1, 2048 }
  0x12   : > { %p1021_p11 = pnand %p726_p9, %p1230_p1  ;;  %p804_p12 = scmp.ne.s32.totalorder %s1225_s1, %s803_s10 }
  0x13   : > { %p810_p5 = scmp.lt.u32.totalorder %s803_s10, %s1225_s1 }
  0x14   : > { %p805_p13 = pneg %p1021_p11 }
  0x16   : > { %p806_p0 = pnand %p805_p13, %p804_p12 }
  0x18   : > { %p807_p3 = pneg %p806_p0 }
  0x1a   : > { %p812_p7 = pnand %p810_p5, %p807_p3 }
  0x1c   : > { %815 = shalt.err (!%p812_p7)
}
  0x1d   : > { %s816_s15 = scalar_lea.vmem %s1014_s28, 2048  ;;  %p824_p2 = scmp.lt.s32.totalorder %s1014_s28, %s1014_s28 }
  0x1e   : > { %p817_p9 = scmp.ne.s32.totalorder %s1014_s28, %s816_s15  ;;  %p825_p6 = scmp.lt.s32.totalorder %s816_s15, %s816_s15 }
  0x20   : > { %p819_p10 = pnand %p817_p9, %p805_p13  ;;  %p826_p4 = por %p825_p6, %p824_p2 }
  0x22   : > { %p820_p1 = pneg %p819_p10 }
  0x24   : > { %p827_p8 = pnand %p826_p4, %p820_p1 }
  0x26   : > { %830 = shalt.err (!%p827_p8)
}
  0x27   : > { %s934_s16 = smov 128   ;;  %s935_s17 = smov 8  }
  0x28   : > { %729 = dma.hbm_to_vmem [thread:$0]  (!%p1021_p11), %s1225_s1, 2048, %s1014_s28, [#allocation6], %s934_s16, %s934_s16, %s935_s17  }
  0x29   : > { %p27_p1 = scmp.eq.s32.totalorder %s26_s7, 0  ;;  %p36_p2 = scmp.ne.s32.totalorder %s927_s20, %s923_s19 }
  0x2a   : > { %p37_p4 = scmp.eq.s32.totalorder %s931_s21, 0  ;;  %p739_p6 = scmp.lt.s32.totalorder %s931_s21, 2 }
  0x2b   : > { %s1060_s8 = scalar_select %p27_p1, %s927_s20, %s29_s6  }
  0x2c   : > { %p38_p8 = por %p37_p4, %p36_p2  ;;  %p1237_p10 = scmp.eq.s32.totalorder %s991_s22, 1 }
  0x2d   : > { %s198_s29 = sand.u32 1, %s927_s20   ;;  %s610_s10 = sshll.u32 %s931_s21, 9 }
  0x2e   : > { %p1064_p12 = por %p1237_p10, %p36_p2  ;;  %s595_s11 = sshll.u32 %s198_s29, 5 }
  0x2f   : > { %s1073_s14 = scalar_lea.hbm %s1224_s0, %s610_s10  ;;  %s202_s28 = scalar_lea.vmem [#allocation2], %s595_s11 }
  0x30   : > { %s209_s6 = sshll.u32 %s202_s28, 4  ;;  %p1075_p11 = pnand %p739_p6, %p38_p8  ;;  %s1079_s6 = int_to_ptr.vmem [resolvable:$true] %s209_s6 }
  0x31   : > { %s1081_s15 = scalar_lea.sflag [#allocation3], %s198_s29  ;;  %s831_s23 = scalar_lea.hbm %s1073_s14, 512 }
  0x32   : > { %p832_p13 = scmp.ne.s32.totalorder %s1073_s14, %s831_s23  ;;  %p833_p0 = pneg %p1075_p11 }
  0x33   : > { %s836_s11 = scalar_lea.hbm %s1224_s0, 1024  ;;  %p837_p7 = scmp.lt.u32.totalorder %s1073_s14, %s1224_s0 }
  0x34   : > { %p834_p3 = pnand %p833_p0, %p832_p13  ;;  %p838_p9 = scmp.lt.u32.totalorder %s836_s11, %s831_s23 }
  0x35   : > { %p840_p2 = scmp.lt.u32.totalorder %s831_s23, %s1073_s14 }
  0x36   : > { %p835_p5 = pneg %p834_p3  ;;  %p839_p1 = por %p838_p9, %p837_p7 }
  0x38   : > { %p841_p4 = por %p840_p2, %p839_p1 }
  0x3a   : > { %p842_p6 = pnand %p841_p4, %p835_p5 }
  0x3c   : > { %845 = shalt.err (!%p842_p6)
}
  0x3d   : > { %s846_s29 = scalar_lea.vmem %s1079_s6, 512  ;;  %s936_s28 = smov [#allocation2]  }
  0x3e   : > { %p847_p8 = scmp.ne.s32.totalorder %s1079_s6, %s846_s29  ;;  %s851_s27 = sshll.u32 %s936_s28, 4  ;;  %s852_s27 = int_to_ptr.vmem [resolvable:$false] %s851_s27 }
  0x3f   : > { %s853_s10 = scalar_lea.vmem %s852_s27, 1024  ;;  %p854_p3 = scmp.lt.s32.totalorder %s1079_s6, %s852_s27 }
  0x40   : > { %p849_p10 = pnand %p847_p8, %p833_p0  ;;  %p855_p7 = scmp.lt.s32.totalorder %s853_s10, %s846_s29 }
  0x42   : > { %p850_p13 = pneg %p849_p10  ;;  %p856_p9 = por %p855_p7, %p854_p3 }
  0x44   : > { %p857_p1 = pnand %p856_p9, %p850_p13 }
  0x46   : > { %860 = shalt.err (!%p857_p1)
}
  0x47   : > { %733 = dma.hbm_to_vmem [thread:$0]  (!%p1075_p11), %s1073_s14, 512, %s1079_s6, %s1081_s15, %s934_s16, %s934_s16, %s935_s17  }
  0x48   : > { %p1240_p0 = scmp.ne.s32.totalorder %s1235_s26, 0 }
  0x49   : > { %s1115_s23 = sand.u32 (!%p1240_p0), 1, %s923_s19   ;;  %p1241_p5 = scmp.ne.s32.totalorder (!%p1240_p0), %s1233_s24, 0 }
  0x4a   : > { %221 = sbr.rel (%p1240_p0) target bundleno = 567 (0x237), region = 40  ;;  %s599_s11 = sshll.u32 (!%p1240_p0), %s1115_s23, 5 }
  0x4b   : > { %s224_s12 = scalar_lea.sflag (!%p1240_p0), [#allocation3], %s1115_s23  ;;  %s1121_s7 = scalar_lea.vmem (!%p1240_p0), [#allocation2], %s599_s11 }
  0x51   : > { %906 = dma.done.wait (%p1241_p5), %s224_s12, 512  }
  0x52   : > { %908 = vsyncadd (%p1241_p5), %s224_s12, 4294966784  ;;  %p1242_p11 = scmp.eq.s32.totalorder %s991_s22, 0 }
  0x54   : > { %910 = dma.done.wait (%p1242_p11), [#allocation6], 2048   ;;  %p1243_p2 = pmov %p1242_p11 }
  0x55   : > { %v264_v0 = vld [vmem:[#allocation5] sm:$0xff]  ;;  %v265_v1 = vld [vmem:[#allocation5 + $0x8] sm:$0xff]  ;;  %v266_v2 = vld [vmem:[#allocation5 + $0x10] sm:$0xff]  ;;  %s611_s15 = sshll.u32 %s991_s22, 9  ;;  %s257_s13 = scalar_lea.vmem [#allocation7], %s599_s11 }
  0x56   : > { %912 = vsyncadd (%p1243_p2), [#allocation6], 4294965248  ;;  %v670_v3 = vpack.c.bf16 %v265_v1, %v264_v0  ;;  %v267_v4 = vld [vmem:[#allocation5 + $0x18] sm:$0xff]  ;;  %v268_v6 = vld [vmem:[#allocation5 + $0x20] sm:$0xff]  ;;  %s508_s29 = sshll.u32 %s257_s13, 4  ;;  %s1177_s10 = scalar_lea.hbm %s1229_s5, %s611_s15  ;;  %s1179_s29 = int_to_ptr.vmem [resolvable:$true] %s508_s29 }
  0x57   : > { %v674_v5 = vpack.c.bf16 %v267_v4, %v266_v2  ;;  %v269_v7 = vld [vmem:[#allocation5 + $0x28] sm:$0xff]  ;;  %v1132_v9 = vld [vmem:[%s1121_s7] sm:$0xff]  ;;  %v1135_v10 = vld [vmem:[%s1121_s7 + $0x10] sm:$0xff]  ;;  %s495_s22 = scalar_lea.sflag [#allocation4], %s1115_s23  ;;  %s861_s11 = scalar_lea.vmem %s1179_s29, 512 }
  0x58   : > { %671 = vmatprep.subr.bf16.mxu0 %v670_v3  ;;  %702 = vmatprep.subr.bf16.mxu1 %v670_v3  ;;  %v678_v8 = vpack.c.bf16 %v269_v7, %v268_v6  ;;  %v270_v11 = vld [vmem:[#allocation5 + $0x30] sm:$0xff]  ;;  %v271_v12 = vld [vmem:[#allocation5 + $0x38] sm:$0xff]  ;;  %v272_v14 = vld [vmem:[#allocation5 + $0x40] sm:$0xff]  ;;  %p862_p4 = scmp.ne.s32.totalorder %s1179_s29, %s861_s11  ;;  %s937_s12 = smov [#allocation7]  }
  0x59   : > { %673 = vmatpush3.bf16.msra.mxu0 %v670_v3  ;;  %710 = vmatpush3.bf16.msra.mxu1 %v670_v3  ;;  %v682_v13 = vpack.c.bf16 %v271_v12, %v270_v11  ;;  %v273_v15 = vld [vmem:[#allocation5 + $0x48] sm:$0xff]  ;;  %v274_v17 = vld [vmem:[#allocation5 + $0x50] sm:$0xff]  ;;  %v275_v18 = vld [vmem:[#allocation5 + $0x58] sm:$0xff] }
  0x5a   : > { %675 = vmatprep.subr.bf16.mxu0 %v674_v5  ;;  %703 = vmatprep.subr.bf16.mxu1 %v674_v5  ;;  %v686_v16 = vpack.c.bf16 %v273_v15, %v272_v14  ;;  %v690_v19 = vpack.c.bf16 %v275_v18, %v274_v17  ;;  %v276_v20 = vld [vmem:[#allocation5 + $0x60] sm:$0xff]  ;;  %v277_v21 = vld [vmem:[#allocation5 + $0x68] sm:$0xff]  ;;  %v278_v23 = vld [vmem:[#allocation5 + $0x70] sm:$0xff]  ;;  %p863_p6 = pnand %p862_p4, %p1064_p12 }
  0x5b   : > { %664 = vmatprep.mubr.f32.mxu0 %v1132_v9  ;;  %667 = vmatprep.mubr.f32.mxu1 %v1135_v10  ;;  %v694_v22 = vpack.c.bf16 %v277_v21, %v276_v20  ;;  %v279_v24 = vld [vmem:[#allocation5 + $0x78] sm:$0xff]  ;;  %v1140_v26 = vld [vmem:[%s1121_s7 + $0x8] sm:$0xff]  ;;  %v602_v28 = vld [vmem:[%s1226_s2] ss:$0 sm:$0xff] }
  0x5c   : > { %v698_v25 = vpack.c.bf16 %v279_v24, %v278_v23  ;;  %v1143_v27 = vld [vmem:[%s1121_s7 + $0x18] sm:$0xff]  ;;  %v603_v14 = vld [vmem:[%s1227_s3] ss:$0 sm:$0xff]  ;;  %p864_p8 = pneg %p863_p6  ;;  %s865_s7 = sshll.u32 %s937_s12, 4  ;;  %s866_s7 = int_to_ptr.vmem [resolvable:$false] %s865_s7 }
  0x5d   : > { %677 = vmatpush3.bf16.msra.mxu0 %v674_v5  ;;  %711 = vmatpush3.bf16.msra.mxu1 %v674_v5  ;;  %v604_v17 = vld [vmem:[%s1228_s4] ss:$0 sm:$0xff]  ;;  %s867_s24 = scalar_lea.vmem %s866_s7, 1024  ;;  %p868_p10 = scmp.lt.s32.totalorder %s1179_s29, %s866_s7 }
  0x5e   : > { %679 = vmatprep.subr.bf16.mxu0 %v678_v8  ;;  %704 = vmatprep.subr.bf16.mxu1 %v678_v8  ;;  %p869_p13 = scmp.lt.s32.totalorder %s867_s24, %s861_s11 }
  0x60   : > { %p870_p3 = por %p869_p13, %p868_p10 }
  0x61   : > { %681 = vmatpush3.bf16.msra.mxu0 %v678_v8  ;;  %712 = vmatpush3.bf16.msra.mxu1 %v678_v8 }
  0x62   : > { %683 = vmatprep.subr.bf16.mxu0 %v682_v13  ;;  %705 = vmatprep.subr.bf16.mxu1 %v682_v13  ;;  %p871_p7 = pnand %p870_p3, %p864_p8 }
  0x65   : > { %685 = vmatpush3.bf16.msra.mxu0 %v682_v13  ;;  %713 = vmatpush3.bf16.msra.mxu1 %v682_v13 }
  0x66   : > { %687 = vmatprep.subr.bf16.mxu0 %v686_v16  ;;  %706 = vmatprep.subr.bf16.mxu1 %v686_v16 }
  0x69   : > { %689 = vmatpush3.bf16.msra.mxu0 %v686_v16  ;;  %714 = vmatpush3.bf16.msra.mxu1 %v686_v16 }
  0x6a   : > { %691 = vmatprep.subr.bf16.mxu0 %v690_v19  ;;  %707 = vmatprep.subr.bf16.mxu1 %v690_v19 }
  0x6d   : > { %693 = vmatpush3.bf16.msra.mxu0 %v690_v19  ;;  %715 = vmatpush3.bf16.msra.mxu1 %v690_v19 }
  0x6e   : > { %695 = vmatprep.subr.bf16.mxu0 %v694_v22  ;;  %708 = vmatprep.subr.bf16.mxu1 %v694_v22 }
  0x71   : > { %697 = vmatpush3.bf16.msra.mxu0 %v694_v22  ;;  %716 = vmatpush3.bf16.msra.mxu1 %v694_v22 }
  0x72   : > { %699 = vmatprep.subr.bf16.mxu0 %v698_v25  ;;  %709 = vmatprep.subr.bf16.mxu1 %v698_v25 }
  0x75   : > { %701 = vmatpush3.bf16.msra.mxu0 %v698_v25  ;;  %717 = vmatpush3.bf16.msra.mxu1 %v698_v25 }
  0x78   : > { %665 = vmatmul.mubr.f32.vlgmr.msra.gmra.mrb[0].mxu0 %v1140_v26  ;;  %668 = vmatmul.mubr.f32.vlgmr.msra.gmra.mrb[0].mxu1 %v1143_v27 }
 0x14b   : > { %v666_v29 = vpop.f32.mrb[0].mxu0  ;;  %v669_v30 = vpop.f32.mrb[0].mxu1 }
 0x14c   : > { %v359_v31 = vadd.f32 %v666_v29, %v602_v28  ;;  %v1150_v32 = vadd.f32 %v669_v30, %v602_v28  ;;  %v353_v33 = vpop.f32.mrb[1].mxu0  ;;  %v363_v34 = vpop.f32.mrb[1].mxu1 }
 0x14d   : > { %v354_v35 = vadd.f32 %v602_v28, %v353_v33  ;;  %v1153_v36 = vadd.f32 %v602_v28, %v363_v34 }
 0x14e   : > { %378 = vadd.xlane.f32.xlu1 %v1150_v32  ;;  %374 = vadd.xlane.f32.xlu0 %v359_v31  ;;  %v385_v37 = vmul.f32 %v359_v31, %v359_v31  ;;  %v387_v39 = vmul.f32 %v1150_v32, %v1150_v32 }
 0x14f   : > { %v384_v38 = vmul.f32 %v354_v35, %v354_v35  ;;  %v386_v40 = vmul.f32 %v1153_v36, %v1153_v36 }
 0x152   : > { %376 = vadd.xlane.f32.xlu1 %v1153_v36  ;;  %372 = vadd.xlane.f32.xlu0 %v354_v35 }
 0x156   : > { %390 = vadd.xlane.f32.xlu1 %v385_v37  ;;  %388 = vadd.xlane.f32.xlu0 %v384_v38 }
 0x15a   : > { %394 = vadd.xlane.f32.xlu1 %v387_v39  ;;  %392 = vadd.xlane.f32.xlu0 %v386_v40 }
 0x1db   : > { %v379_v41 = vpop.xlane.xlu1 %378  ;;  %v375_v42 = vpop.xlane.xlu0 %374 }
 0x1dc   : > { %v381_v45 = vmul.f32 0.0078125, %v375_v42  ;;  %v383_v47 = vmul.f32 0.0078125, %v379_v41 }
 0x1de   : > { %v401_v51 = vmul.f32 %v381_v45, %v381_v45  ;;  %v403_v57 = vmul.f32 %v383_v47, %v383_v47  ;;  %v413_v11 = vsub.f32 %v359_v31, %v381_v45  ;;  %v415_v19 = vsub.f32 %v1150_v32, %v383_v47 }
 0x1df   : > { %v377_v43 = vpop.xlane.xlu1 %376  ;;  %v373_v44 = vpop.xlane.xlu0 %372 }
 0x1e0   : > { %v380_v46 = vmul.f32 0.0078125, %v373_v44  ;;  %v382_v48 = vmul.f32 0.0078125, %v377_v43 }
 0x1e2   : > { %v400_v52 = vmul.f32 %v380_v46, %v380_v46  ;;  %v402_v58 = vmul.f32 %v382_v48, %v382_v48  ;;  %v412_v13 = vsub.f32 %v354_v35, %v380_v46  ;;  %v414_v22 = vsub.f32 %v1153_v36, %v382_v48 }
 0x1e3   : > { %v391_v49 = vpop.xlane.xlu1 %390  ;;  %v389_v50 = vpop.xlane.xlu0 %388 }
 0x1e4   : > { %v397_v53 = vmul.f32 0.0078125, %v391_v49  ;;  %v396_v54 = vmul.f32 0.0078125, %v389_v50 }
 0x1e6   : > { %v405_v55 = vsub.f32 %v397_v53, %v401_v51  ;;  %v404_v56 = vsub.f32 %v396_v54, %v400_v52 }
 0x1e7   : > { %v395_v59 = vpop.xlane.xlu1 %394  ;;  %v393_v60 = vpop.xlane.xlu0 %392 }
 0x1e8   : > { %v409_v61 = vmax.f32 %v405_v55, 0.0  ;;  %v408_v62 = vmax.f32 %v404_v56, 0.0  ;;  %v399_v63 = vmul.f32 0.0078125, %v395_v59  ;;  %v398_v0 = vmul.f32 0.0078125, %v393_v60 }
 0x1ea   : > { %v417_v1 = vadd.f32 1e-05, %v409_v61  ;;  %v416_v2 = vadd.f32 1e-05, %v408_v62  ;;  %v407_v3 = vsub.f32 %v399_v63, %v403_v57  ;;  %v406_v4 = vsub.f32 %v398_v0, %v402_v58 }
 0x1ec   : > { %779 = vrsqrt.f32 %v417_v1  ;;  %v411_v5 = vmax.f32 %v407_v3, 0.0  ;;  %v410_v6 = vmax.f32 %v406_v4, 0.0 }
 0x1ed   : > { %781 = vrsqrt.f32 %v416_v2 }
 0x1ee   : > { %v419_v7 = vadd.f32 1e-05, %v411_v5  ;;  %v418_v8 = vadd.f32 1e-05, %v410_v6 }
 0x1f0   : > { %783 = vrsqrt.f32 %v419_v7 }
 0x1f1   : > { %785 = vrsqrt.f32 %v418_v8 }
 0x1f6   : > { %v780_v12 = vpop.eup %779 }
 0x1f7   : > { %v782_v15 = vpop.eup %781  ;;  %v425_v16 = vmul.f32 %v780_v12, %v413_v11 }
 0x1f8   : > { %v424_v18 = vmul.f32 %v782_v15, %v412_v13 }
 0x1f9   : > { %v436_v20 = vmul.f32 %v603_v14, %v425_v16 }
 0x1fa   : > { %v784_v21 = vpop.eup %783  ;;  %v435_v23 = vmul.f32 %v603_v14, %v424_v18 }
 0x1fb   : > { %v786_v24 = vpop.eup %785  ;;  %v447_v25 = vadd.f32 %v604_v17, %v436_v20  ;;  %v427_v28 = vmul.f32 %v784_v21, %v415_v19 }
 0x1fc   : > { %v446_v29 = vadd.f32 %v604_v17, %v435_v23  ;;  %v426_v30 = vmul.f32 %v786_v24, %v414_v22 }
 0x1fd   : > { %v451_v31 = vmin.f32 %v447_v25, 20.0  ;;  %v438_v33 = vmul.f32 %v603_v14, %v427_v28 }
 0x1fe   : > { %v450_v34 = vmin.f32 %v446_v29, 20.0  ;;  %v437_v35 = vmul.f32 %v603_v14, %v426_v30 }
 0x1ff   : > { %v456_v37 = vmul.f32 1.442695, %v451_v31  ;;  %v449_v38 = vadd.f32 %v604_v17, %v438_v33 }
 0x200   : > { %v454_v39 = vmul.f32 1.442695, %v450_v34  ;;  %v448_v40 = vadd.f32 %v604_v17, %v437_v35 }
 0x201   : > { %787 = vpow2.f32 %v456_v37  ;;  %v453_v32 = vmin.f32 %v449_v38, 20.0 }
 0x202   : > { %789 = vpow2.f32 %v454_v39  ;;  %v452_v41 = vmin.f32 %v448_v40, 20.0 }
 0x203   : > { %v460_v42 = vmul.f32 1.442695, %v453_v32 }
 0x204   : > { %v458_v36 = vmul.f32 1.442695, %v452_v41 }
 0x205   : > { %791 = vpow2.f32 %v460_v42 }
 0x206   : > { %793 = vpow2.f32 %v458_v36 }
 0x20b   : > { %v788_v43 = vpop.eup %787 }
 0x20c   : > { %v790_v44 = vpop.eup %789  ;;  %v463_v45 = vadd.f32 2.0, %v788_v43 }
 0x20d   : > { %v462_v46 = vadd.f32 2.0, %v790_v44 }
 0x20e   : > { %v467_v47 = vmul.f32 %v788_v43, %v463_v45 }
 0x20f   : > { %v792_v48 = vpop.eup %791  ;;  %v466_v49 = vmul.f32 %v790_v44, %v462_v46 }
 0x210   : > { %v794_v50 = vpop.eup %793  ;;  %v471_v51 = vadd.f32 2.0, %v467_v47  ;;  %v465_v52 = vadd.f32 2.0, %v792_v48 }
 0x211   : > { %v470_v53 = vadd.f32 2.0, %v466_v49  ;;  %v464_v54 = vadd.f32 2.0, %v794_v50 }
 0x212   : > { %795 = vrcp.f32 %v471_v51  ;;  %v469_v55 = vmul.f32 %v792_v48, %v465_v52 }
 0x213   : > { %797 = vrcp.f32 %v470_v53  ;;  %v468_v56 = vmul.f32 %v794_v50, %v464_v54 }
 0x214   : > { %v473_v57 = vadd.f32 2.0, %v469_v55 }
 0x215   : > { %v472_v58 = vadd.f32 2.0, %v468_v56 }
 0x216   : > { %799 = vrcp.f32 %v473_v57 }
 0x217   : > { %801 = vrcp.f32 %v472_v58 }
 0x21c   : > { %v796_v59 = vpop.eup %795 }
 0x21d   : > { %v798_v60 = vpop.eup %797  ;;  %v477_v61 = vmul.f32 %v796_v59, %v467_v47 }
 0x21e   : > { %v475_v62 = vmul.f32 %v798_v60, %v466_v49 }
 0x21f   : > { %v483_v63 = vmul.f32 %v477_v61, %v447_v25 }
 0x220   : > { %v800_v0 = vpop.eup %799  ;;  %v482_v1 = vmul.f32 %v475_v62, %v446_v29 }
 0x221   : > { %v802_v2 = vpop.eup %801  ;;  %v487_v3 = vadd.f32 %v483_v63, %v1140_v26  ;;  %v481_v4 = vmul.f32 %v800_v0, %v469_v55 }
 0x222   : > { %v486_v5 = vadd.f32 %v482_v1, %v1132_v9  ;;  %v479_v6 = vmul.f32 %v802_v2, %v468_v56 }
 0x223   : > { %v485_v7 = vmul.f32 %v481_v4, %v449_v38  ;;  %491 = vst [vmem:[%s257_s13 + $0x8] sm:$0xff] %v487_v3 }
 0x224   : > { %v484_v8 = vmul.f32 %v479_v6, %v448_v40  ;;  %490 = vst [vmem:[%s257_s13] sm:$0xff] %v486_v5 }
 0x225   : > { %v489_v11 = vadd.f32 %v485_v7, %v1143_v27 }
 0x226   : > { %v488_v9 = vadd.f32 %v484_v8, %v1135_v10 }
 0x227   : > { %493 = vst [vmem:[%s257_s13 + $0x18] sm:$0xff] %v489_v11 }
 0x228   : > { %492 = vst [vmem:[%s257_s13 + $0x10] sm:$0xff] %v488_v9 }
 0x229   : > { %874 = shalt.err (!%p871_p7)
}
 0x22a   : > { %s875_s26 = scalar_lea.hbm %s1177_s10, 512  ;;  %s879_s14 = scalar_lea.hbm %s1229_s5, 1024 }
 0x22b   : > { %p876_p9 = scmp.ne.s32.totalorder %s1177_s10, %s875_s26  ;;  %p880_p5 = scmp.lt.u32.totalorder %s1177_s10, %s1229_s5 }
 0x22c   : > { %p881_p11 = scmp.lt.u32.totalorder %s879_s14, %s875_s26  ;;  %p883_p4 = scmp.lt.u32.totalorder %s875_s26, %s1177_s10 }
 0x22d   : > { %p877_p1 = pnand %p876_p9, %p1064_p12 }
 0x22e   : > { %p882_p2 = por %p881_p11, %p880_p5 }
 0x22f   : > { %p878_p0 = pneg %p877_p1 }
 0x230   : > { %p884_p6 = por %p883_p4, %p882_p2 }
 0x232   : > { %p885_p8 = pnand %p884_p6, %p878_p0 }
 0x234   : > { %888 = shalt.err (!%p885_p8)
}
 0x235   : > { %s938_s13 = smov 128   ;;  %s939_s28 = smov 8  }
 0x236   : > { %724 = dma.vmem_to_hbm [thread:$0]  (%p1064_p12), %s1179_s29, 512, %s1177_s10, %s495_s22, %s938_s13, %s938_s13, %s939_s28  }
 0x237 PF: > { %s523_s27 = sand.u32 1, %s919_s18   ;;  %p1244_p10 = scmp.ne.s32.totalorder %s1234_s25, 0 }
 0x238   : > { %p1245_p13 = scmp.ge.s32.totalorder %s931_s21, 2  ;;  %s524_s11 = scalar_lea.sflag [#allocation4], %s523_s27 }
 0x23a   : > { %p735_p3 = pnand %p1245_p13, %p1244_p10 }
 0x23c   : > { %914 = dma.done.wait (!%p735_p3), %s524_s11, 512  }
 0x23d   : > { %916 = vsyncadd (!%p735_p3), %s524_s11, 4294966784  ;;  %p19_p7 = scmp.ge.s32.totalorder %s1026_s30, 4   ;;  %s1246_s18 = smov %s923_s19 }
 0x23e   : > { %s1247_s19 = smov %s927_s20  ;;  %s1248_s20 = smov %s1060_s8 }
 0x23f   : > { %s1249_s21 = smov %s1026_s30  ;;  %21 = sbr.rel (!%p19_p7) target bundleno = 6 (0x6), region = 89 }
 0x246   :  { %529 = vsyncpa [#allocation3], 1 }
 0x247   :  { %531 = vsyncpa [#allocation3 + $0x1], 1 }
 0x248   :  { %532 = vsyncpa [#allocation6], 1 }
 0x249   :  { %533 = vsyncpa [#allocation4], 1 }
 0x24a   :  { %535 = vsyncpa [#allocation4 + $0x1], 1 }

</bundles_post_ra>
